<compile_context>
chip_gen: v6e
topology: v6e:2x2x1
jax: 0.10.0
libtpu: 0.0.40
codegen_flags: <defaults>
</compile_context>

<pallas_src>
import jax
import jax.numpy as jnp
from jax.experimental import pallas as pl
from jax.experimental.pallas import tpu as pltpu


def _add_noise_kernel(x_ref, n_ref, scale_ref, out_ref):
    # x_ref   : (1, T)  native-dtype VMEM tile of the waveform
    # n_ref   : (1, T)  native-dtype VMEM tile of the noise asset (same offsets)
    # scale_ref: (S,)   f32 SMEM — precomputed per-SNR scales
    # out_ref : (S, T)  output tile (final dtype), written directly to (S, L)
    x = x_ref[...].astype(jnp.float32)
    n = n_ref[...].astype(jnp.float32)
    num_snrs = out_ref.shape[0]
    for s in range(num_snrs):                 # static unroll, S == 3
        out_ref[pl.ds(s, 1), :] = (x + scale_ref[s] * n).astype(out_ref.dtype)


def audio_corrupter_forward(x, noise_full, snr_dbs, *, max_tile=128 * 1024):
    """x: (1, L), noise_full: (1, >=L), snr_dbs: (S,) -> (S, L) of x.dtype."""
    C, L = x.shape
    assert C == 1, "mono waveform expected (matches the torchaudio test asset)"
    # TODO(synk): generalize to multi-channel input (per-channel energies).
    S = int(snr_dbs.shape[0])

    # ---- global per-SNR scale: one tiny fused XLA reduction per input.
    # (The scale depends on a sum over all L samples, so it is hoisted out of
    # the tiled kernel; the slice/square fuse into the reduction — no copies.)
    xf = x[0].astype(jnp.float32)
    nf = noise_full[0, :L].astype(jnp.float32)
    energy_signal = jnp.sum(xf * xf)
    energy_noise = jnp.sum(nf * nf)
    # Note: zero-energy signal/noise yields +-inf scale, same as torchaudio.
    original_snr_db = 10.0 * (jnp.log10(energy_signal) - jnp.log10(energy_noise))
    scale = (10.0 ** ((original_snr_db - snr_dbs.astype(jnp.float32)) / 20.0))  # (S,)

    # ---- tile selection: multiple of 128 lanes, >= ~4 grid steps when the
    # clip is long enough, capped so double-buffered VMEM fits comfortably.
    tile_l = min(max_tile, max(128, pl.cdiv(pl.cdiv(L, 4), 128) * 128))
    grid = (pl.cdiv(L, tile_l),)              # ragged last block is masked

    out = pl.pallas_call(
        _add_noise_kernel,
        out_shape=jax.ShapeDtypeStruct((S, L), x.dtype),
        grid=grid,
        in_specs=[
            pl.BlockSpec((1, tile_l), lambda i: (0, i)),             # x tile
            pl.BlockSpec((1, tile_l), lambda i: (0, i)),             # noise tile
            pl.BlockSpec(memory_space=pltpu.MemorySpace.SMEM),       # scales
        ],
        out_specs=pl.BlockSpec((S, tile_l), lambda i: (0, i)),
        compiler_params=pltpu.CompilerParams(
            dimension_semantics=("parallel",),
            vmem_limit_bytes=32 * 1024 * 1024,
        ),
    )(x, noise_full, scale)
    return out


def _reference(x, noise_full, snr_dbs):
    noise = noise_full[:, : x.shape[1]]
    es = jnp.sum(x * x, axis=-1)              # (1,)
    en = jnp.sum(noise * noise, axis=-1)      # (1,)
    orig = 10.0 * (jnp.log10(es) - jnp.log10(en))            # (1,)
    scale = 10.0 ** ((orig - snr_dbs) / 20.0)                 # (S,)
    return x + scale[:, None] * noise                         # (S, L)


if __name__ == "__main__":
    key = jax.random.PRNGKey(0)
    k_x, k_n = jax.random.split(key)

    # ~1 second of mono 8 kHz audio (matches the 8000 Hz babble-noise asset).
    C, L, NOISE_LEN = 1, 8000, 16000

    # Deterministic synthetic inputs (no .wav loading — synthetic "babble").
    x = 0.5 * jax.random.normal(k_x, (C, L), dtype=jnp.float32)
    noise_full = 0.1 * jax.random.normal(k_n, (C, NOISE_LEN), dtype=jnp.float32)
    snr_dbs = jnp.array([20.0, 10.0, 3.0], dtype=jnp.float32)

    # L=8000 -> adaptive tile_l=2048, grid=(4,) with a masked partial last
    # block: exercises multi-step pipelining + ragged-edge handling.
    out = audio_corrupter_forward(x, noise_full, snr_dbs)
    out = jax.block_until_ready(out)

    ref = _reference(x, noise_full, snr_dbs)
    assert out.shape == (3, L), out.shape
    assert out.dtype == x.dtype, out.dtype
    assert jnp.allclose(out, ref, rtol=1e-4, atol=1e-5), "mismatch vs reference"

    print("KERNEL_OK")
</pallas_src>

<mosaic_0001>
module attributes {stable_mosaic.version = 11 : i64} {
  func.func @_add_noise_kernel(%arg0: i32, %arg1: memref<1x2048xf32, #tpu.memory_space<vmem>>, %arg2: memref<1x2048xf32, #tpu.memory_space<vmem>>, %arg3: memref<3xf32, #tpu.memory_space<smem>>, %arg4: memref<3x2048xf32, #tpu.memory_space<vmem>>) attributes {dimension_semantics = [#tpu.dimension_semantics<parallel>], iteration_bounds = array<i64: 4>, scalar_prefetch = 0 : i64, scratch_operands = 0 : i64, tpu.core_type = #tpu.core_type<tc>, window_params = [{transform_indices = @transform_0, window_bounds = array<i64: 1, 2048>}, {transform_indices = @transform_1, window_bounds = array<i64: 1, 2048>}, {transform_indices = @transform_2, window_bounds = array<i64: 3>}, {transform_indices = @transform_3, window_bounds = array<i64: 3, 2048>}]} {
    %c0 = arith.constant 0 : index
    %c0_0 = arith.constant 0 : index
    %0 = vector.load %arg1[%c0, %c0_0] : memref<1x2048xf32, #tpu.memory_space<vmem>>, vector<1x2048xf32>
    %c0_1 = arith.constant 0 : index
    %c0_2 = arith.constant 0 : index
    %1 = vector.load %arg2[%c0_1, %c0_2] : memref<1x2048xf32, #tpu.memory_space<vmem>>, vector<1x2048xf32>
    %c0_3 = arith.constant 0 : index
    %2 = memref.load %arg3[%c0_3] : memref<3xf32, #tpu.memory_space<smem>>
    %3 = vector.broadcast %2 : f32 to vector<1x2048xf32>
    %4 = arith.mulf %3, %1 : vector<1x2048xf32>
    %5 = arith.addf %0, %4 : vector<1x2048xf32>
    %c0_4 = arith.constant 0 : index
    %c0_5 = arith.constant 0 : index
    %6 = vector.load %arg4[%c0_4, %c0_5] : memref<3x2048xf32, #tpu.memory_space<vmem>>, vector<1x2048xf32>
    tpu.vector_store %arg4[%c0_4, %c0_5], %5 {strides = array<i32>} : memref<3x2048xf32, #tpu.memory_space<vmem>>, vector<1x2048xf32>,
    %c1 = arith.constant 1 : index
    %7 = memref.load %arg3[%c1] : memref<3xf32, #tpu.memory_space<smem>>
    %8 = vector.broadcast %7 : f32 to vector<1x2048xf32>
    %9 = arith.mulf %8, %1 : vector<1x2048xf32>
    %10 = arith.addf %0, %9 : vector<1x2048xf32>
    %c1_6 = arith.constant 1 : index
    %c0_7 = arith.constant 0 : index
    %11 = vector.load %arg4[%c1_6, %c0_7] : memref<3x2048xf32, #tpu.memory_space<vmem>>, vector<1x2048xf32>
    tpu.vector_store %arg4[%c1_6, %c0_7], %10 {strides = array<i32>} : memref<3x2048xf32, #tpu.memory_space<vmem>>, vector<1x2048xf32>,
    %c2 = arith.constant 2 : index
    %12 = memref.load %arg3[%c2] : memref<3xf32, #tpu.memory_space<smem>>
    %13 = vector.broadcast %12 : f32 to vector<1x2048xf32>
    %14 = arith.mulf %13, %1 : vector<1x2048xf32>
    %15 = arith.addf %0, %14 : vector<1x2048xf32>
    %c2_8 = arith.constant 2 : index
    %c0_9 = arith.constant 0 : index
    %16 = vector.load %arg4[%c2_8, %c0_9] : memref<3x2048xf32, #tpu.memory_space<vmem>>, vector<1x2048xf32>
    tpu.vector_store %arg4[%c2_8, %c0_9], %15 {strides = array<i32>} : memref<3x2048xf32, #tpu.memory_space<vmem>>, vector<1x2048xf32>,
    return
  }
  func.func @transform_0(%arg0: i32) -> (i32, i32) {
    %c0_i32 = arith.constant 0 : i32
    %c0_i32_0 = arith.constant 0 : i32
    return %c0_i32, %arg0 : i32, i32
  }
  func.func @transform_1(%arg0: i32) -> (i32, i32) {
    %c0_i32 = arith.constant 0 : i32
    %c0_i32_0 = arith.constant 0 : i32
    return %c0_i32, %arg0 : i32, i32
  }
  func.func @transform_2(%arg0: i32) -> i32 {
    %c0_i32 = arith.constant 0 : i32
    %c0_i32_0 = arith.constant 0 : i32
    return %c0_i32 : i32
  }
  func.func @transform_3(%arg0: i32) -> (i32, i32) {
    %c0_i32 = arith.constant 0 : i32
    %c0_i32_0 = arith.constant 0 : i32
    return %c0_i32, %arg0 : i32, i32
  }
}

</mosaic_0001>

<bundles_post_ra>
// kernel: tpu_custom_call.1
= control target key start
LH: loop header
LB: loop body
LE: loop exit
PB: predicated region body
PF: predicated region fallthrough
CT: control target
= control target key end

     0   :  { %8 = vsyncpa [#allocation3], 0  ;;  %s880_s0 = inlined_call_operand.hbm [shape: f32[1,8000], index: 0, kind: input, shape index: {}]   ;;  %s881_s1 = inlined_call_operand.hbm [shape: f32[1,16000], index: 1, kind: input, shape index: {}]   ;;  %s882_s2 = inlined_call_operand.vmem [shape: f32[3], index: 2, kind: input, shape index: {}]   ;;  %s883_s3 = inlined_call_operand.hbm [shape: f32[3,8000], index: 3, kind: output, shape index: {}]  }
   0x1   :  { %10 = vsyncpa [#allocation3 + $0x1], 0 }
   0x2   :  { %11 = vsyncpa [#allocation7], 0 }
   0x3   :  { %13 = vsyncpa [#allocation7 + $0x1], 0 }
   0x4   :  { %14 = vsyncpa [#allocation5], 0 }
   0x5   :  { %15 = vsyncpa [#allocation4], 0 }
   0x6   :  { %17 = vsyncpa [#allocation4 + $0x1], 0  ;;  %s677_s12 = smov 0   ;;  %s679_s13 = smov 0  }
   0x7   :  { %s681_s14 = smov 0   ;;  %s683_s15 = smov 0  }
   0x8 LB: > { %s698_s16 = sadd.s32 4294967295, %s651_s15   ;;  %s423_s17 = sadd.s32 4294967294, %s651_s15   ;;  %s651_s15 = sphi %s683_s15, %s901_s15   ;;  %s647_s14 = sphi %s681_s14, %s900_s14   ;;  %s643_s13 = sphi %s679_s13, %s899_s13   ;;  %s639_s12 = sphi %s677_s12, %s898_s12  }
   0x9   : > { %s702_s18 = sadd.s32 1, %s651_s15   ;;  %s30_s19 = sadd.s32 1, %s647_s14 }
   0xa   : > { %s27_s20 = ssub.s32 %s651_s15, %s702_s18  ;;  %p37_p0 = scmp.ne.s32.totalorder %s647_s14, %s643_s13 }
   0xb   : > { %p28_p1 = scmp.eq.s32.totalorder %s27_s20, 0  ;;  %p38_p2 = scmp.eq.s32.totalorder %s651_s15, 0 }
   0xc   : > { %p43_p3 = scmp.ne.s32.totalorder %s643_s13, %s639_s12  ;;  %p885_p4 = scmp.eq.s32.totalorder %s698_s16, 0 }
   0xd   : > { %s714_s21 = scalar_select %p28_p1, %s647_s14, %s30_s19  }
   0xe   : > { %p716_p5 = por %p38_p2, %p37_p0  ;;  %p722_p6 = por %p885_p4, %p43_p3 }
   0xf   : > { %p114_p7 = scmp.eq.s32.totalorder %s698_s16, 3  ;;  %p120_p8 = scmp.eq.s32.totalorder %s423_s17, 3 }
  0x10   : > { %s888_s23 = scalar_select %p722_p6, 1, 0 }
  0x11   : > { %p424_p9 = scmp.ge.s32.totalorder %s651_s15, 1  ;;  %p127_p10 = scmp.lt.s32.totalorder %s651_s15, 5 }
  0x12   : > { %p729_p11 = por %p114_p7, %p37_p0  ;;  %p733_p12 = por %p120_p8, %p43_p3 }
  0x13   : > { %p737_p13 = pnand %p424_p9, %p127_p10  ;;  %s140_s29 = sshll.u32 %s882_s2, 4  ;;  %s141_s29 = int_to_ptr.vmem [resolvable:$true] %s140_s29 }
  0x14   : > { %s889_s24 = scalar_select %p729_p11, 1, 0 }
  0x15   : > { %s890_s25 = scalar_select %p733_p12, 1, 0 }
  0x16   : > { %s891_s26 = scalar_select %p737_p13, 1, 0 }
  0x17   : > { %p468_p1 = pneg %p737_p13  ;;  %s512_s30 = scalar_lea.vmem %s141_s29, 16 }
  0x18   : > { %p513_p2 = scmp.ne.s32.totalorder %s141_s29, %s512_s30  ;;  %p520_p12 = scmp.lt.s32.totalorder %s141_s29, %s141_s29 }
  0x19   : > { %p469_p0 = pnand %p468_p1, %p885_p4  ;;  %p521_p9 = scmp.lt.s32.totalorder %s512_s30, %s512_s30 }
  0x1b   : > { %p514_p3 = pneg %p469_p0  ;;  %p522_p10 = por %p521_p9, %p520_p12 }
  0x1d   : > { %p515_p7 = pnand %p514_p3, %p513_p2 }
  0x1f   : > { %p516_p8 = pneg %p515_p7 }
  0x21   : > { %p523_p11 = pnand %p522_p10, %p516_p8 }
  0x23   : > { %526 = shalt.err (!%p523_p11)
}
  0x24   : > { %s653_s4 = smov [#allocation8]   ;;  %p426_p6 = scmp.ge.s32.totalorder %s651_s15, 4 }
  0x25   : > { %471 = dma.vmem_to_smem (!%p469_p0), %s141_s29, 16, %s653_s4, [#allocation5]  }
  0x26   : > { %147 = sbr.rel (%p426_p6) target bundleno = 105 (0x69), region = 20 }
  0x2b   : > { %150 = sbr.rel (!%p716_p5) target bundleno = 74 (0x4a), region = 24  ;;  %s151_s5 = sand.u32 (%p716_p5), 1, %s647_s14  }
  0x2c   : > { %s428_s6 = sshll.u32 (%p716_p5), %s651_s15, 4  ;;  %s427_s7 = sshll.u32 (%p716_p5), %s151_s5, 4 }
  0x2d   : > { %s157_s8 = ssub.s32 (%p716_p5), 63, %s428_s6  ;;  %s756_s11 = scalar_lea.sflag (%p716_p5), [#allocation3], %s151_s5 }
  0x2e   : > { %p158_p1 = scmp.lt.s32.totalorder (%p716_p5), %s157_s8, 16  ;;  %s155_s17 = scalar_lea.vmem (%p716_p5), [#allocation2], %s427_s7 }
  0x30   : > { %s903_s8 = smov (!%p158_p1, %s157_s8), 16 }
  0x31   : > { %s753_s9 = sshll.u32 %s903_s8, 4 }
  0x32   : > { %s162_s10 = ssub.s32 256, %s753_s9 }
  0x33   : > { %163 = vsyncadd %s756_s11, %s162_s10  ;;  %p430_p6 = scmp.ne.s32.totalorder %s753_s9, 0  ;;  %s458_s19 = sshll.u32 %s651_s15, 8 }
  0x34   : > { %s166_s28 = scalar_lea.hbm %s880_s0, %s458_s19  ;;  %s168_s29 = sshll.u32 %s155_s17, 4  ;;  %s169_s29 = int_to_ptr.vmem [resolvable:$true] %s168_s29 }
  0x35   : > { %s527_s30 = scalar_lea.hbm %s166_s28, %s753_s9  ;;  %s531_s6 = scalar_lea.hbm %s880_s0, 1008 }
  0x36   : > { %p528_p11 = scmp.ne.s32.totalorder %s166_s28, %s527_s30  ;;  %p532_p2 = scmp.lt.s32.totalorder %s166_s28, %s880_s0 }
  0x37   : > { %p533_p3 = scmp.lt.s32.totalorder %s531_s6, %s527_s30 }
  0x38   : > { %p529_p12 = pnand %p528_p11, %p430_p6 }
  0x39   : > { %p534_p7 = por %p533_p3, %p532_p2 }
  0x3a   : > { %p530_p0 = pneg %p529_p12 }
  0x3c   : > { %p535_p8 = pnand %p534_p7, %p530_p0 }
  0x3e   : > { %538 = shalt.err (!%p535_p8)
}
  0x3f   : > { %s539_s10 = scalar_lea.vmem %s169_s29, %s753_s9  ;;  %s654_s17 = smov [#allocation2]  }
  0x40   : > { %p540_p9 = scmp.ne.s32.totalorder %s169_s29, %s539_s10  ;;  %s543_s19 = sshll.u32 %s654_s17, 4  ;;  %s544_s19 = int_to_ptr.vmem [resolvable:$false] %s543_s19 }
  0x41   : > { %s545_s20 = scalar_lea.vmem %s544_s19, 512  ;;  %p546_p11 = scmp.lt.s32.totalorder %s169_s29, %s544_s19 }
  0x42   : > { %p541_p10 = pnand %p540_p9, %p430_p6  ;;  %p547_p12 = scmp.lt.s32.totalorder %s545_s20, %s539_s10 }
  0x44   : > { %p542_p1 = pneg %p541_p10  ;;  %p548_p4 = por %p547_p12, %p546_p11 }
  0x46   : > { %p549_p13 = pnand %p548_p4, %p542_p1 }
  0x48   : > { %552 = shalt.err (!%p549_p13)
}
  0x49   : > { %171 = dma.hbm_to_vmem [thread:$0]  (%p430_p6), %s166_s28, %s753_s9, %s169_s29, %s756_s11  }
  0x4a PF: > { %174 = sbr.rel (!%p716_p5) target bundleno = 105 (0x69), region = 28  ;;  %s175_s27 = sand.u32 (%p716_p5), 1, %s647_s14  }
  0x4b   : > { %s433_s30 = sshll.u32 (%p716_p5), %s651_s15, 4  ;;  %s432_s4 = sshll.u32 (%p716_p5), %s175_s27, 4 }
  0x4c   : > { %s181_s5 = ssub.s32 (%p716_p5), 125, %s433_s30  ;;  %s787_s8 = scalar_lea.sflag (%p716_p5), [#allocation7], %s175_s27 }
  0x4d   : > { %p182_p0 = scmp.lt.s32.totalorder (%p716_p5), %s181_s5, 16  ;;  %s179_s9 = scalar_lea.vmem (%p716_p5), [#allocation6], %s432_s4 }
  0x4f   : > { %s905_s5 = smov (!%p182_p0, %s181_s5), 16 }
  0x50   : > { %s784_s6 = sshll.u32 %s905_s5, 4 }
  0x51   : > { %s186_s7 = ssub.s32 256, %s784_s6 }
  0x52   : > { %187 = vsyncadd %s787_s8, %s186_s7  ;;  %p435_p4 = scmp.ne.s32.totalorder %s784_s6, 0  ;;  %s459_s22 = sshll.u32 %s651_s15, 8 }
  0x53   : > { %s190_s29 = scalar_lea.hbm %s881_s1, %s459_s22  ;;  %s192_s10 = sshll.u32 %s179_s9, 4  ;;  %s193_s10 = int_to_ptr.vmem [resolvable:$true] %s192_s10 }
  0x54   : > { %s553_s17 = scalar_lea.hbm %s190_s29, %s784_s6  ;;  %s557_s27 = scalar_lea.hbm %s881_s1, 2000 }
  0x55   : > { %p554_p5 = scmp.ne.s32.totalorder %s190_s29, %s553_s17  ;;  %p558_p2 = scmp.lt.s32.totalorder %s190_s29, %s881_s1 }
  0x56   : > { %p559_p3 = scmp.lt.s32.totalorder %s557_s27, %s553_s17 }
  0x57   : > { %p555_p13 = pnand %p554_p5, %p435_p4 }
  0x58   : > { %p560_p7 = por %p559_p3, %p558_p2 }
  0x59   : > { %p556_p6 = pneg %p555_p13 }
  0x5b   : > { %p561_p8 = pnand %p560_p7, %p556_p6 }
  0x5d   : > { %564 = shalt.err (!%p561_p8)
}
  0x5e   : > { %s565_s5 = scalar_lea.vmem %s193_s10, %s784_s6  ;;  %s655_s7 = smov [#allocation6]  }
  0x5f   : > { %p566_p9 = scmp.ne.s32.totalorder %s193_s10, %s565_s5  ;;  %s569_s9 = sshll.u32 %s655_s7, 4  ;;  %s570_s9 = int_to_ptr.vmem [resolvable:$false] %s569_s9 }
  0x60   : > { %s571_s22 = scalar_lea.vmem %s570_s9, 512  ;;  %p572_p11 = scmp.lt.s32.totalorder %s193_s10, %s570_s9 }
  0x61   : > { %p567_p10 = pnand %p566_p9, %p435_p4  ;;  %p573_p12 = scmp.lt.s32.totalorder %s571_s22, %s565_s5 }
  0x63   : > { %p568_p1 = pneg %p567_p10  ;;  %p574_p0 = por %p573_p12, %p572_p11 }
  0x65   : > { %p575_p5 = pnand %p574_p0, %p568_p1 }
  0x67   : > { %578 = shalt.err (!%p575_p5)
}
  0x68   : > { %195 = dma.hbm_to_vmem [thread:$0]  (%p435_p4), %s190_s29, %s784_s6, %s193_s10, %s787_s8  }
  0x69 PF: > { %p892_p13 = scmp.ne.s32.totalorder %s891_s26, 0 }
  0x6a   : > { %s814_s11 = sand.u32 (!%p892_p13), 1, %s643_s13   ;;  %p893_p6 = scmp.ne.s32.totalorder (!%p892_p13), %s888_s23, 0 }
  0x6b   : > { %201 = sbr.rel (%p892_p13) target bundleno = 161 (0xa1), region = 32  ;;  %s438_s28 = sshll.u32 (!%p892_p13), %s814_s11, 4 }
  0x6c   : > { %s204_s17 = scalar_lea.sflag (!%p892_p13), [#allocation3], %s814_s11  ;;  %s207_s19 = scalar_lea.vmem (!%p892_p13), [#allocation2], %s438_s28 }
  0x70   : > { %622 = dma.done.wait (%p893_p6), %s204_s17, 256  }
  0x71   : > { %624 = vsyncadd (%p893_p6), %s204_s17, 4294967040  ;;  %s213_s6 = scalar_lea.sflag [#allocation7], %s814_s11  ;;  %s216_s8 = scalar_lea.vmem [#allocation6], %s438_s28 }
  0x72   : > { %626 = dma.done.wait (%p893_p6), %s213_s6, 256  }
  0x73   : > { %628 = vsyncadd (%p893_p6), %s213_s6, 4294967040  ;;  %p894_p4 = scmp.eq.s32.totalorder %s698_s16, 0 }
  0x75   : > { %630 = dma.done.wait (%p894_p4), [#allocation5], 16   ;;  %p895_p2 = pmov %p894_p4 }
  0x77   : > { %632 = vsyncadd (%p895_p2), [#allocation5], 4294967280 }
  0x78   : > { %225 = sfence }
  0x79   : > { %s268_s26 = sld [smem:[#allocation8]]  ;;  %v266_v0 = vld [vmem:[%s216_s8] sm:$0xff]  ;;  %v267_v1 = vld [vmem:[%s216_s8 + $0x8] sm:$0xff]  ;;  %s441_s20 = sshll.u32 %s814_s11, 6 }
  0x7a   : > { %s443_s29 = sld [smem:[#allocation8 + $0x1]]  ;;  %v264_v2 = vld [vmem:[%s207_s19] sm:$0xff]  ;;  %v265_v4 = vld [vmem:[%s207_s19 + $0x8] sm:$0xff]  ;;  %s248_s23 = scalar_lea.vmem [#allocation9], %s441_s20 }
  0x7b   : > { %s446_s10 = sld [smem:[#allocation8 + $0x2]]  ;;  %s298_s27 = scalar_lea.sflag [#allocation4], %s814_s11 }
  0x7c   : > { %p896_p3 = scmp.ne.s32.totalorder %s889_s24, 0 }
  0x7d   : > { %s450_s30 = sshll.u32 (%p896_p3), %s698_s16, 4 }
  0x7e   : > { %s306_s4 = ssub.s32 (%p896_p3), 63, %s450_s30 }
  0x7f   : > { %v269_v3 = vstv %s268_s26  ;;  %p307_p7 = scmp.lt.s32.totalorder (%p896_p3), %s306_s4, 16 }
  0x80   : > { %v270_v5 = vmul.f32 %v269_v3, %v266_v0  ;;  %v271_v6 = vmul.f32 %v269_v3, %v267_v1  ;;  %v278_v7 = vstv %s443_s29 }
  0x81   : > { %v279_v8 = vmul.f32 %v278_v7, %v266_v0  ;;  %v280_v9 = vmul.f32 %v278_v7, %v267_v1  ;;  %v288_v10 = vstv %s446_s10 }
  0x82   : > { %v272_v11 = vadd.f32 %v270_v5, %v264_v2  ;;  %v273_v12 = vadd.f32 %v271_v6, %v265_v4  ;;  %v289_v13 = vmul.f32 %v288_v10, %v266_v0  ;;  %v290_v14 = vmul.f32 %v288_v10, %v267_v1  ;;  %304 = sbr.rel (!%p896_p3) target bundleno = 161 (0xa1), region = 48 }
  0x83   : > { %v281_v15 = vadd.f32 %v279_v8, %v264_v2  ;;  %v282_v16 = vadd.f32 %v280_v9, %v265_v4 }
  0x84   : > { %274 = vst [vmem:[%s248_s23] ss:$4 sm:$0xff] %v272_v11  ;;  %442 = vst [vmem:[%s248_s23 + $0x20] ss:$4 sm:$0xff] %v273_v12  ;;  %v291_v17 = vadd.f32 %v289_v13, %v264_v2  ;;  %v292_v18 = vadd.f32 %v290_v14, %v265_v4 }
  0x85   : > { %444 = vst [vmem:[%s248_s23 + $0x1] ss:$4 sm:$0xff] %v281_v15  ;;  %445 = vst [vmem:[%s248_s23 + $0x21] ss:$4 sm:$0xff] %v282_v16 }
  0x86   : > { %447 = vst [vmem:[%s248_s23 + $0x2] ss:$4 sm:$0xff] %v291_v17  ;;  %448 = vst [vmem:[%s248_s23 + $0x22] ss:$4 sm:$0xff] %v292_v18 }
  0x87   : > { %s907_s4 = smov (!%p307_p7, %s306_s4), 16 }
  0x88   : > { %s836_s5 = sshll.u32 %s907_s4, 6 }
  0x89   : > { %s311_s7 = ssub.s32 1024, %s836_s5 }
  0x8a   : > { %312 = vsyncadd %s298_s27, %s311_s7  ;;  %p452_p8 = scmp.ne.s32.totalorder %s836_s5, 0  ;;  %s460_s9 = sshll.u32 %s698_s16, 10 }
  0x8b   : > { %s315_s28 = scalar_lea.hbm %s883_s3, %s460_s9  ;;  %s318_s17 = sshll.u32 %s248_s23, 4  ;;  %s319_s17 = int_to_ptr.vmem [resolvable:$true] %s318_s17 }
  0x8c   : > { %s579_s19 = scalar_lea.vmem %s319_s17, %s836_s5  ;;  %s656_s6 = smov [#allocation9]  }
  0x8d   : > { %p580_p9 = scmp.ne.s32.totalorder %s319_s17, %s579_s19  ;;  %s583_s8 = sshll.u32 %s656_s6, 4  ;;  %s584_s8 = int_to_ptr.vmem [resolvable:$false] %s583_s8 }
  0x8e   : > { %s585_s26 = scalar_lea.vmem %s584_s8, 2048  ;;  %p586_p11 = scmp.lt.s32.totalorder %s319_s17, %s584_s8 }
  0x8f   : > { %p581_p10 = pnand %p580_p9, %p452_p8  ;;  %p587_p12 = scmp.lt.s32.totalorder %s585_s26, %s579_s19 }
  0x91   : > { %p582_p1 = pneg %p581_p10  ;;  %p588_p0 = por %p587_p12, %p586_p11 }
  0x93   : > { %p589_p5 = pnand %p588_p0, %p582_p1 }
  0x95   : > { %592 = shalt.err (!%p589_p5)
}
  0x96   : > { %s593_s16 = scalar_lea.hbm %s315_s28, %s836_s5  ;;  %s597_s20 = scalar_lea.hbm %s883_s3, 4032 }
  0x97   : > { %p594_p13 = scmp.ne.s32.totalorder %s315_s28, %s593_s16  ;;  %p598_p2 = scmp.lt.s32.totalorder %s315_s28, %s883_s3 }
  0x98   : > { %p599_p3 = scmp.lt.s32.totalorder %s597_s20, %s593_s16 }
  0x99   : > { %p595_p6 = pnand %p594_p13, %p452_p8 }
  0x9a   : > { %p600_p7 = por %p599_p3, %p598_p2 }
  0x9b   : > { %p596_p4 = pneg %p595_p6 }
  0x9d   : > { %p601_p9 = pnand %p600_p7, %p596_p4 }
  0x9f   : > { %604 = shalt.err (!%p601_p9)
}
  0xa0   : > { %321 = dma.vmem_to_hbm [thread:$0]  (%p452_p8), %s319_s17, %s836_s5, %s315_s28, %s298_s27  }
  0xa1 PF: > { %p478_p10 = scmp.ge.s32.totalorder %s651_s15, 2  ;;  %s330_s4 = sand.u32 1, %s639_s12  }
  0xa2   : > { %p897_p1 = scmp.ne.s32.totalorder %s890_s25, 0  ;;  %s331_s7 = scalar_lea.sflag [#allocation4], %s330_s4 }
  0xa4   : > { %p473_p11 = pnand %p478_p10, %p897_p1 }
  0xa6   : > { %p474_p12 = pneg %p473_p11 }
  0xa8   : > { %634 = dma.done.wait (%p474_p12), %s331_s7, 1024  }
  0xa9   : > { %636 = vsyncadd (%p474_p12), %s331_s7, 4294966272  ;;  %p20_p0 = scmp.ge.s32.totalorder %s702_s18, 6   ;;  %s898_s12 = smov %s643_s13 }
  0xaa   : > { %s899_s13 = smov %s647_s14  ;;  %s900_s14 = smov %s714_s21 }
  0xab   : > { %s901_s15 = smov %s702_s18  ;;  %22 = sbr.rel (!%p20_p0) target bundleno = 8 (0x8), region = 100 }
  0xb0   :  { %336 = vsyncpa [#allocation3], 1 }
  0xb1   :  { %338 = vsyncpa [#allocation3 + $0x1], 1 }
  0xb2   :  { %339 = vsyncpa [#allocation7], 1 }
  0xb3   :  { %341 = vsyncpa [#allocation7 + $0x1], 1 }
  0xb4   :  { %342 = vsyncpa [#allocation4], 1 }
  0xb5   :  { %344 = vsyncpa [#allocation4 + $0x1], 1 }
  0xb6   :  { %345 = vsyncpa [#allocation5], 1 }
  0xb7   :  { %347 = vsyncpa [#allocation5 + $0x1], 1 }

</bundles_post_ra>
